<compile_context>
chip_gen: v5e
topology: v5e:2x2
jax: 0.10.0
libtpu: 0.0.40
codegen_flags: <defaults>
</compile_context>

<pallas_src>
import functools
import math

import jax
import jax.numpy as jnp
from jax.experimental import pallas as pl
from jax.experimental.pallas import tpu as pltpu

LN_EPS = 1e-12


def _round_up(x, m):
    return ((x + m - 1) // m) * m


def _layer_norm_f32(x, w, b):
    # FMLP-Rec custom LayerNorm: mean / biased variance over hidden, eps=1e-12.
    u = jnp.mean(x, axis=-1, keepdims=True)
    s = jnp.mean((x - u) ** 2, axis=-1, keepdims=True)
    # rsqrt on the (tile, 1) column lands on the EUP slot; the wide op is a multiply.
    return (x - u) * jax.lax.rsqrt(s + LN_EPS) * w + b


def _fmlp_block_kernel(fft_ref, inp_ref, w1_ref, b1_ref, w2_ref, consts_ref, out_ref,
                       *, approx_gelu):
    # consts_ref rows: 0=ln1_w, 1=ln1_b, 2=ln2_w, 3=ln2_b, 4=b2   (all (1, H) slices)
    ln1_w = consts_ref[0:1, :]
    ln1_b = consts_ref[1:2, :]
    ln2_w = consts_ref[2:3, :]
    ln2_b = consts_ref[3:4, :]
    b2 = consts_ref[4:5, :]

    # out_dropout is identity (eval mode): residual add of filtered signal + input.
    # All LN / residual math in f32 regardless of stream dtype (eps=1e-12 < bf16 ulp).
    x = fft_ref[...].astype(jnp.float32) + inp_ref[...].astype(jnp.float32)
    h = _layer_norm_f32(x, ln1_w, ln1_b)

    # FeedForward: dense_1 -> GELU -> dense_2 -> (dropout=id) -> +residual -> LN #2.
    # bf16 MXU inputs, f32 accumulation; elementwise math stays f32.
    z = jnp.dot(h.astype(jnp.bfloat16), w1_ref[...],
                preferred_element_type=jnp.float32) + b1_ref[...]
    if approx_gelu:
        # tanh GELU runs on the EUP slot and co-issues with MXU/VALU work.
        # TODO(synk): ~1e-3 deviation vs. the exact erf GELU of the PyTorch reference.
        c = math.sqrt(2.0 / math.pi)
        z = 0.5 * z * (1.0 + jnp.tanh(c * (z + 0.044715 * z * z * z)))
    else:
        z = 0.5 * z * (1.0 + jax.lax.erf(z * (1.0 / math.sqrt(2.0))))
    y = jnp.dot(z.astype(jnp.bfloat16), w2_ref[...],
                preferred_element_type=jnp.float32) + b2
    y = y + h

    out_ref[...] = _layer_norm_f32(y, ln2_w, ln2_b).astype(out_ref.dtype)


def _vmem_capacity_bytes():
    try:
        cap = int(getattr(pltpu.get_tpu_info(), "vmem_capacity_bytes", 0))
        if cap > 0:
            return cap
    except Exception:
        pass
    return 64 * 1024 * 1024  # conservative fallback == v7x per-TensorCore VMEM


def _pick_tile_and_vmem(N, H, I, act_bytes, row_tile):
    cap = _vmem_capacity_bytes()
    # Leave headroom for internal scratch: ~48 MiB on v7x, ~112 MiB on v5e/v6e.
    vmem_limit = min(max(cap - 16 * 1024 * 1024, 32 * 1024 * 1024), 112 * 1024 * 1024)

    if row_tile is not None:
        tile = max(8, _round_up(int(row_tile), 8))
    else:
        tile = 512 if cap >= 96 * 1024 * 1024 else 256   # v5e/v6e : v7x

        def footprint(t):
            streams = 2 * 3 * t * H * act_bytes          # double-buffered in/in/out row blocks
            weights = 2 * (2 * H * I) + 4 * (I + 5 * H)  # single-buffered invariant operands
            scratch = 4 * t * (I + 3 * H)                # f32 intermediates (z and x/h/y)
            return streams + weights + scratch

        while tile > 64 and footprint(tile) > int(0.7 * vmem_limit):
            tile //= 2

    if tile >= N:
        tile = N  # one full block; full-extent dims bypass the (8,128) rule
    return tile, vmem_limit


def _fmlprec_block(hidden_states, params, *, row_tile=None, approx_gelu=True):
    B, S, H = hidden_states.shape
    I = params["w1"].shape[1]
    in_dtype = hidden_states.dtype

    # --- FMLPRecLayer frequency filter (glue) ---
    # TODO(synk): rfft/irfft have no Pallas TPU primitive; computed in plain JAX/XLA here.
    x_f = jnp.fft.rfft(hidden_states, axis=1, norm="ortho")
    w_c = params["complex_weight"][..., 0] + 1j * params["complex_weight"][..., 1]
    seq_fft = jnp.fft.irfft(x_f * w_c, n=S, axis=1, norm="ortho")

    # Stream activations in the model dtype; no wrapper-side upcast / pad / slice passes.
    N = B * S
    fft_flat = seq_fft.astype(in_dtype).reshape(N, H)
    inp_flat = hidden_states.reshape(N, H)

    act_bytes = jnp.dtype(in_dtype).itemsize
    tile, vmem_limit = _pick_tile_and_vmem(N, H, I, act_bytes, row_tile)
    grid = (pl.cdiv(N, tile),)   # ragged last block handled by Pallas (row-wise math)

    # bf16 weights: half the weight DMA bytes + bf16 MXU rate (f32 accumulation in-kernel).
    w1 = params["w1"].astype(jnp.bfloat16)
    w2 = params["w2"].astype(jnp.bfloat16)
    b1 = params["b1"].astype(jnp.float32)
    consts = jnp.concatenate(
        [params["ln1_w"], params["ln1_b"], params["ln2_w"], params["ln2_b"], params["b2"]],
        axis=0).astype(jnp.float32)                      # (5, H) packed small vectors

    row_spec = pl.BlockSpec((tile, H), lambda i: (i, 0))
    # Grid-invariant operands: constant index_map + single buffer (no double-buffer VMEM).
    inv = lambda shape: pl.BlockSpec(shape, lambda i: (0, 0),
                                     pipeline_mode=pl.Buffered(buffer_count=1))

    cost = pl.CostEstimate(
        flops=4 * N * H * I,                              # two (tile,H)x(H,I)-class matmuls
        transcendentals=N * I,                            # one tanh/erf per FF-intermediate elt
        bytes_accessed=3 * N * H * act_bytes + 2 * H * I * 2 + (I + 5 * H) * 4,
    )

    out = pl.pallas_call(
        functools.partial(_fmlp_block_kernel, approx_gelu=approx_gelu),
        out_shape=jax.ShapeDtypeStruct((N, H), in_dtype),
        grid=grid,
        in_specs=[
            row_spec, row_spec,            # filtered signal, residual input
            inv((H, I)), inv((1, I)),      # dense_1 weight / bias
            inv((I, H)),                   # dense_2 weight
            inv((5, H)),                   # packed [ln1_w, ln1_b, ln2_w, ln2_b, b2]
        ],
        out_specs=row_spec,
        input_output_aliases={0: 0},       # write result over the fft_flat HBM buffer
        compiler_params=pltpu.CompilerParams(
            dimension_semantics=("parallel",),   # row axis shards across TCs (v7x megacore)
            vmem_limit_bytes=int(vmem_limit),
        ),
        cost_estimate=cost,
    )(fft_flat, inp_flat, w1, b1, w2, consts)

    return out.reshape(B, S, H)


fmlprec_block = jax.jit(_fmlprec_block, static_argnames=("row_tile", "approx_gelu"))


def init_params(key, seq_len, hidden):
    """Deterministic synthetic parameters matching FMLPRecBlock.__init__ shapes."""
    inter = 4 * hidden
    k0, k1, k2, k3, k4 = jax.random.split(key, 5)
    return dict(
        # nn.Parameter(randn(1, S//2+1, H, 2) * 0.02)
        complex_weight=0.02 * jax.random.normal(
            k0, (1, seq_len // 2 + 1, hidden, 2), jnp.float32),
        # FeedForward dense_1: Linear(H, 4H); stored (in, out)
        w1=0.02 * jax.random.normal(k1, (hidden, inter), jnp.float32),
        b1=0.02 * jax.random.normal(k2, (1, inter), jnp.float32),
        # FeedForward dense_2: Linear(4H, H); stored (in, out)
        w2=0.02 * jax.random.normal(k3, (inter, hidden), jnp.float32),
        b2=0.02 * jax.random.normal(k4, (1, hidden), jnp.float32),
        # Both LayerNorms init: weight=1, bias=0
        ln1_w=jnp.ones((1, hidden), jnp.float32),
        ln1_b=jnp.zeros((1, hidden), jnp.float32),
        ln2_w=jnp.ones((1, hidden), jnp.float32),
        ln2_b=jnp.zeros((1, hidden), jnp.float32),
    )


if __name__ == "__main__":
    B, S, H = 2, 8, 32  # batch, max_seq_length, hidden_size
    key = jax.random.PRNGKey(0)
    kx, kp = jax.random.split(key)
    x = jax.random.normal(kx, (B, S, H), jnp.float32)
    params = init_params(kp, S, H)

    out = fmlprec_block(x, params)
    jax.block_until_ready(out)
    assert out.shape == (B, S, H) and out.dtype == x.dtype
    assert bool(jnp.all(jnp.isfinite(out)))
    print("KERNEL_OK")
</pallas_src>

<mosaic_0001>
module attributes {stable_mosaic.version = 11 : i64} {
  func.func @_fmlp_block_kernel(%arg0: i32, %arg1: memref<16x32xf32, #tpu.memory_space<vmem>>, %arg2: memref<16x32xf32, #tpu.memory_space<vmem>>, %arg3: memref<32x128xbf16, #tpu.memory_space<vmem>>, %arg4: memref<1x128xf32, #tpu.memory_space<vmem>>, %arg5: memref<128x32xbf16, #tpu.memory_space<vmem>>, %arg6: memref<5x32xf32, #tpu.memory_space<vmem>>, %arg7: memref<16x32xf32, #tpu.memory_space<vmem>>) attributes {dimension_semantics = [#tpu.dimension_semantics<parallel>], iteration_bounds = array<i64: 1>, scalar_prefetch = 0 : i64, scratch_operands = 0 : i64, tpu.core_type = #tpu.core_type<tc>, window_params = [{transform_indices = @transform_0, window_bounds = array<i64: 16, 32>}, {transform_indices = @transform_1, window_bounds = array<i64: 16, 32>}, {pipeline_mode = #tpu.pipeline_mode<synchronous>, transform_indices = @transform_2, window_bounds = array<i64: 32, 128>}, {pipeline_mode = #tpu.pipeline_mode<synchronous>, transform_indices = @transform_3, window_bounds = array<i64: 1, 128>}, {pipeline_mode = #tpu.pipeline_mode<synchronous>, transform_indices = @transform_4, window_bounds = array<i64: 128, 32>}, {pipeline_mode = #tpu.pipeline_mode<synchronous>, transform_indices = @transform_5, window_bounds = array<i64: 5, 32>}, {transform_indices = @transform_6, window_bounds = array<i64: 16, 32>}]} {
    %c0 = arith.constant 0 : index
    %c0_0 = arith.constant 0 : index
    %0 = vector.load %arg6[%c0, %c0_0] : memref<5x32xf32, #tpu.memory_space<vmem>>, vector<1x32xf32>
    %c1 = arith.constant 1 : index
    %c0_1 = arith.constant 0 : index
    %1 = vector.load %arg6[%c1, %c0_1] : memref<5x32xf32, #tpu.memory_space<vmem>>, vector<1x32xf32>
    %c2 = arith.constant 2 : index
    %c0_2 = arith.constant 0 : index
    %2 = vector.load %arg6[%c2, %c0_2] : memref<5x32xf32, #tpu.memory_space<vmem>>, vector<1x32xf32>
    %c3 = arith.constant 3 : index
    %c0_3 = arith.constant 0 : index
    %3 = vector.load %arg6[%c3, %c0_3] : memref<5x32xf32, #tpu.memory_space<vmem>>, vector<1x32xf32>
    %c4 = arith.constant 4 : index
    %c0_4 = arith.constant 0 : index
    %4 = vector.load %arg6[%c4, %c0_4] : memref<5x32xf32, #tpu.memory_space<vmem>>, vector<1x32xf32>
    %c0_5 = arith.constant 0 : index
    %c0_6 = arith.constant 0 : index
    %5 = vector.load %arg1[%c0_5, %c0_6] : memref<16x32xf32, #tpu.memory_space<vmem>>, vector<16x32xf32>
    %c0_7 = arith.constant 0 : index
    %c0_8 = arith.constant 0 : index
    %6 = vector.load %arg2[%c0_7, %c0_8] : memref<16x32xf32, #tpu.memory_space<vmem>>, vector<16x32xf32>
    %7 = arith.addf %5, %6 : vector<16x32xf32>
    %cst = arith.constant dense<0.000000e+00> : vector<16xf32>
    %8 = vector.multi_reduction <add>, %7, %cst [1] : vector<16x32xf32> to vector<16xf32>
    %9 = vector.shape_cast %8 : vector<16xf32> to vector<16x1xf32>
    %cst_9 = arith.constant 3.200000e+01 : f32
    %10 = vector.broadcast %cst_9 : f32 to vector<16x1xf32>
    %11 = arith.divf %9, %10 : vector<16x1xf32>
    %12 = vector.broadcast %11 : vector<16x1xf32> to vector<16x32xf32>
    %13 = arith.subf %7, %12 : vector<16x32xf32>
    %14 = arith.mulf %13, %13 : vector<16x32xf32>
    %cst_10 = arith.constant dense<0.000000e+00> : vector<16xf32>
    %15 = vector.multi_reduction <add>, %14, %cst_10 [1] : vector<16x32xf32> to vector<16xf32>
    %16 = vector.shape_cast %15 : vector<16xf32> to vector<16x1xf32>
    %cst_11 = arith.constant 3.200000e+01 : f32
    %17 = vector.broadcast %cst_11 : f32 to vector<16x1xf32>
    %18 = arith.divf %16, %17 : vector<16x1xf32>
    %19 = vector.broadcast %11 : vector<16x1xf32> to vector<16x32xf32>
    %20 = arith.subf %7, %19 : vector<16x32xf32>
    %cst_12 = arith.constant 9.99999996E-13 : f32
    %21 = vector.broadcast %cst_12 : f32 to vector<16x1xf32>
    %22 = arith.addf %18, %21 : vector<16x1xf32>
    %23 = math.rsqrt %22 : vector<16x1xf32>
    %24 = vector.broadcast %23 : vector<16x1xf32> to vector<16x32xf32>
    %25 = arith.mulf %20, %24 : vector<16x32xf32>
    %26 = vector.broadcast %0 : vector<1x32xf32> to vector<16x32xf32>
    %27 = arith.mulf %25, %26 : vector<16x32xf32>
    %28 = vector.broadcast %1 : vector<1x32xf32> to vector<16x32xf32>
    %29 = arith.addf %27, %28 : vector<16x32xf32>
    %30 = arith.truncf %29 : vector<16x32xf32> to vector<16x32xbf16>
    %c0_13 = arith.constant 0 : index
    %c0_14 = arith.constant 0 : index
    %31 = vector.load %arg3[%c0_13, %c0_14] : memref<32x128xbf16, #tpu.memory_space<vmem>>, vector<32x128xbf16>
    %cst_15 = arith.constant dense<0.000000e+00> : vector<16x128xf32>
    %32 = tpu.matmul %30, %31, %cst_15 {dimension_numbers = #tpu.dot_dimension_numbers<[1], [0], [0], [1], [0, 0, 1, 1], [], []>} : vector<16x32xbf16>, vector<32x128xbf16>, vector<16x128xf32> -> vector<16x128xf32>
    %c0_16 = arith.constant 0 : index
    %c0_17 = arith.constant 0 : index
    %33 = vector.load %arg4[%c0_16, %c0_17] : memref<1x128xf32, #tpu.memory_space<vmem>>, vector<1x128xf32>
    %34 = vector.broadcast %33 : vector<1x128xf32> to vector<16x128xf32>
    %35 = arith.addf %32, %34 : vector<16x128xf32>
    %cst_18 = arith.constant 5.000000e-01 : f32
    %36 = vector.broadcast %cst_18 : f32 to vector<16x128xf32>
    %37 = arith.mulf %36, %35 : vector<16x128xf32>
    %cst_19 = arith.constant 4.471500e-02 : f32
    %38 = vector.broadcast %cst_19 : f32 to vector<16x128xf32>
    %39 = arith.mulf %38, %35 : vector<16x128xf32>
    %40 = arith.mulf %39, %35 : vector<16x128xf32>
    %41 = arith.mulf %40, %35 : vector<16x128xf32>
    %42 = arith.addf %35, %41 : vector<16x128xf32>
    %cst_20 = arith.constant 0.797884583 : f32
    %43 = vector.broadcast %cst_20 : f32 to vector<16x128xf32>
    %44 = arith.mulf %43, %42 : vector<16x128xf32>
    %45 = math.tanh %44 : vector<16x128xf32>
    %cst_21 = arith.constant 1.000000e+00 : f32
    %46 = vector.broadcast %cst_21 : f32 to vector<16x128xf32>
    %47 = arith.addf %46, %45 : vector<16x128xf32>
    %48 = arith.mulf %37, %47 : vector<16x128xf32>
    %49 = arith.truncf %48 : vector<16x128xf32> to vector<16x128xbf16>
    %c0_22 = arith.constant 0 : index
    %c0_23 = arith.constant 0 : index
    %50 = vector.load %arg5[%c0_22, %c0_23] : memref<128x32xbf16, #tpu.memory_space<vmem>>, vector<128x32xbf16>
    %cst_24 = arith.constant dense<0.000000e+00> : vector<16x32xf32>
    %51 = tpu.matmul %49, %50, %cst_24 {dimension_numbers = #tpu.dot_dimension_numbers<[1], [0], [0], [1], [0, 0, 1, 1], [], []>} : vector<16x128xbf16>, vector<128x32xbf16>, vector<16x32xf32> -> vector<16x32xf32>
    %52 = vector.broadcast %4 : vector<1x32xf32> to vector<16x32xf32>
    %53 = arith.addf %51, %52 : vector<16x32xf32>
    %54 = arith.addf %53, %29 : vector<16x32xf32>
    %cst_25 = arith.constant dense<0.000000e+00> : vector<16xf32>
    %55 = vector.multi_reduction <add>, %54, %cst_25 [1] : vector<16x32xf32> to vector<16xf32>
    %56 = vector.shape_cast %55 : vector<16xf32> to vector<16x1xf32>
    %cst_26 = arith.constant 3.200000e+01 : f32
    %57 = vector.broadcast %cst_26 : f32 to vector<16x1xf32>
    %58 = arith.divf %56, %57 : vector<16x1xf32>
    %59 = vector.broadcast %58 : vector<16x1xf32> to vector<16x32xf32>
    %60 = arith.subf %54, %59 : vector<16x32xf32>
    %61 = arith.mulf %60, %60 : vector<16x32xf32>
    %cst_27 = arith.constant dense<0.000000e+00> : vector<16xf32>
    %62 = vector.multi_reduction <add>, %61, %cst_27 [1] : vector<16x32xf32> to vector<16xf32>
    %63 = vector.shape_cast %62 : vector<16xf32> to vector<16x1xf32>
    %cst_28 = arith.constant 3.200000e+01 : f32
    %64 = vector.broadcast %cst_28 : f32 to vector<16x1xf32>
    %65 = arith.divf %63, %64 : vector<16x1xf32>
    %66 = vector.broadcast %58 : vector<16x1xf32> to vector<16x32xf32>
    %67 = arith.subf %54, %66 : vector<16x32xf32>
    %cst_29 = arith.constant 9.99999996E-13 : f32
    %68 = vector.broadcast %cst_29 : f32 to vector<16x1xf32>
    %69 = arith.addf %65, %68 : vector<16x1xf32>
    %70 = math.rsqrt %69 : vector<16x1xf32>
    %71 = vector.broadcast %70 : vector<16x1xf32> to vector<16x32xf32>
    %72 = arith.mulf %67, %71 : vector<16x32xf32>
    %73 = vector.broadcast %2 : vector<1x32xf32> to vector<16x32xf32>
    %74 = arith.mulf %72, %73 : vector<16x32xf32>
    %75 = vector.broadcast %3 : vector<1x32xf32> to vector<16x32xf32>
    %76 = arith.addf %74, %75 : vector<16x32xf32>
    %c0_30 = arith.constant 0 : index
    %c0_31 = arith.constant 0 : index
    %77 = vector.load %arg7[%c0_30, %c0_31] : memref<16x32xf32, #tpu.memory_space<vmem>>, vector<16x32xf32>
    tpu.vector_store %arg7[%c0_30, %c0_31], %76 {strides = array<i32>} : memref<16x32xf32, #tpu.memory_space<vmem>>, vector<16x32xf32>,
    return
  }
  func.func @transform_0(%arg0: i32) -> (i32, i32) {
    %c0_i32 = arith.constant 0 : i32
    %c0_i32_0 = arith.constant 0 : i32
    return %arg0, %c0_i32 : i32, i32
  }
  func.func @transform_1(%arg0: i32) -> (i32, i32) {
    %c0_i32 = arith.constant 0 : i32
    %c0_i32_0 = arith.constant 0 : i32
    return %arg0, %c0_i32 : i32, i32
  }
  func.func @transform_2(%arg0: i32) -> (i32, i32) {
    %c0_i32 = arith.constant 0 : i32
    %c0_i32_0 = arith.constant 0 : i32
    %c0_i32_1 = arith.constant 0 : i32
    return %c0_i32, %c0_i32_0 : i32, i32
  }
  func.func @transform_3(%arg0: i32) -> (i32, i32) {
    %c0_i32 = arith.constant 0 : i32
    %c0_i32_0 = arith.constant 0 : i32
    %c0_i32_1 = arith.constant 0 : i32
    return %c0_i32, %c0_i32_0 : i32, i32
  }
  func.func @transform_4(%arg0: i32) -> (i32, i32) {
    %c0_i32 = arith.constant 0 : i32
    %c0_i32_0 = arith.constant 0 : i32
    %c0_i32_1 = arith.constant 0 : i32
    return %c0_i32, %c0_i32_0 : i32, i32
  }
  func.func @transform_5(%arg0: i32) -> (i32, i32) {
    %c0_i32 = arith.constant 0 : i32
    %c0_i32_0 = arith.constant 0 : i32
    %c0_i32_1 = arith.constant 0 : i32
    return %c0_i32, %c0_i32_0 : i32, i32
  }
  func.func @transform_6(%arg0: i32) -> (i32, i32) {
    %c0_i32 = arith.constant 0 : i32
    %c0_i32_0 = arith.constant 0 : i32
    return %arg0, %c0_i32 : i32, i32
  }
}

</mosaic_0001>

<bundles_post_ra>
// kernel: reverse.0
= control target key start
LH: loop header
LB: loop body
LE: loop exit
PB: predicated region body
PF: predicated region fallthrough
CT: control target
= control target key end

     0   :  { %v55_v2 = vld [vmem:[#allocation1 + $0x8] sm:$0xf]  ;;  %v62_v3 = vld [vmem:[#allocation1] sm:$0xf]  ;;  %v72_v5 = vlaneseq  ;;  %s178_s0 = inlined_call_operand.vmem [shape: f32[2,32,3], index: 0, kind: input, shape index: {}]   ;;  %s179_s1 = inlined_call_operand.vmem [shape: f32[2,32,3], index: 1, kind: output, shape index: {}]  }
   0x1   :  { %v19_v0 = vld [vmem:[%s178_s0] sm:$0xf]  ;;  %v21_v1 = vld [vmem:[%s178_s0 + $0x4] sm:$0xf]  ;;  %57 = vst [vmem:[#allocation0 + $0x10] sm:$0xf] %v55_v2 }
   0x2   :  { %20 = vst [vmem:[#allocation1 + $0x4] sm:$0xf] %v19_v0  ;;  %v73_v11 = vshrl.u32 %v72_v5, 7 }
   0x3   :  { %22 = vst [vmem:[#allocation1 + $0xc] sm:$0xf] %v21_v1 }
   0x4   :  { %63 = vst [vmem:[#allocation0] sm:$0xf] %v62_v3  ;;  %vm74_vm0 = vcmp.lt.s32.totalorder %v73_v11, 3 }
   0x8   :  { %v79_v7 = vld [vmem:[#allocation0 + $0x17] ss:$-1 sm:$0xff] }
   0x9   :  { %v59_v4 = vld [vmem:[#allocation1 + $0x4] sm:$0xf]  ;;  %v80_v9 = vrot.slane %v79_v7, 5 }
   0xa   :  { %v51_v6 = vld [vmem:[#allocation1 + $0xc] sm:$0xf]  ;;  %61 = vst [vmem:[#allocation0 + $0x8] sm:$0xf] %v59_v4 }
   0xb   :  { %53 = vst [vmem:[#allocation0 + $0x18] sm:$0xf] %v51_v6  ;;  %v65_v8 = vld [vmem:[#allocation0 + $0x7] ss:$-1 sm:$0xff] }
   0xc   :  { %v66_v10 = vrot.slane %v65_v8, 5  ;;  %81 = vst [vmem:[#allocation2 + $0x8] sm:$0xff] %v80_v9 }
   0xe   :  { %67 = vst [vmem:[#allocation2] sm:$0xff] %v66_v10 }
  0x11   :  { %v70_v12 = vld [vmem:[#allocation0 + $0xf] ss:$-1 sm:$0xff] }
  0x12   :  { %v71_v13 = vrot.slane %v70_v12, 5  ;;  %v84_v14 = vld [vmem:[#allocation0 + $0x1f] ss:$-1 sm:$0xff] }
  0x13   :  { %v85_v15 = vrot.slane %v84_v14, 5 }
  0x14   :  { %75 = vst.msk [vmem:[#allocation2] sm:$0xff] %vm74_vm0, %v71_v13 }
  0x15   :  { %89 = vst.msk [vmem:[#allocation2 + $0x8] sm:$0xff] %vm74_vm0, %v85_v15 }
  0x1b   :  { %v92_v16 = vld [vmem:[#allocation2] sm:$0xf] }
  0x1c   :  { %95 = vst [vmem:[#allocation3] sm:$0xf] %v92_v16  ;;  %v97_v17 = vld [vmem:[#allocation2 + $0x8] sm:$0xf] }
  0x1d   :  { %101 = vst [vmem:[#allocation3 + $0x4] sm:$0xf] %v97_v17 }
  0x24   :  { %v118_v18 = vld [vmem:[#allocation3] sm:$0xff]  }
  0x25   :  { %119 = vst [vmem:[%s179_s1] sm:$0xff] %v118_v18  }

// kernel: _fmlprec_block.1
= control target key start
LH: loop header
LB: loop body
LE: loop exit
PB: predicated region body
PF: predicated region fallthrough
CT: control target
= control target key end

     0   :  { %vm35_vm0 = vcmask 261120   ;;  %v359_v8 = vmov 32.0   ;;  %s482_s0 = inlined_call_operand.vmem [shape: f32[16,32], index: 0, kind: input, shape index: {}, may-alias: {0,6}]   ;;  %s483_s1 = inlined_call_operand.vmem [shape: f32[16,32], index: 1, kind: input, shape index: {}]   ;;  %s484_s5 = inlined_call_operand.vmem [shape: f32[5,32], index: 5, kind: input, shape index: {}]   ;;  %s485_s3 = inlined_call_operand.vmem [shape: f32[1,128], index: 3, kind: input, shape index: {}]   ;;  %s486_s2 = inlined_call_operand.vmem [shape: bf16[32,128], index: 2, kind: input, shape index: {}]   ;;  %s487_s4 = inlined_call_operand.vmem [shape: bf16[128,32], index: 4, kind: input, shape index: {}]   ;;  %s488_s6 = inlined_call_operand.vmem [shape: f32[16,32], index: 6, kind: output, shape index: {}, may-alias: {0,6}]  }
   0x1   :  { %v29_v0 = vld [vmem:[%s482_s0] sm:$0xff]  ;;  %v30_v3 = vld [vmem:[%s482_s0 + $0x8] sm:$0xff]  ;;  %345 = vrcp.f32 %v359_v8  ;;  %v337_v56 = vld [vmem:[%s487_s4 + $0x38] sm:$0xff] }
   0x2   :  { %v31_v1 = vld [vmem:[%s483_s1] sm:$0xff]  ;;  %v32_v4 = vld [vmem:[%s483_s1 + $0x8] sm:$0xff]  ;;  %215 = vmatpush.bf16.msra.mxu1 %v337_v56  ;;  %v336_v57 = vld [vmem:[%s487_s4 + $0x30] sm:$0xff] }
   0x3   :  { %v33_v2 = vadd.f32 %v31_v1, %v29_v0  ;;  %v34_v6 = vadd.f32 %v32_v4, %v30_v3  ;;  %v329_v25 = vld [vmem:[%s486_s2 + $0x8] sm:$0xff]  ;;  %v328_v27 = vld [vmem:[%s486_s2] sm:$0xff]  ;;  %v333_v60 = vld [vmem:[%s487_s4 + $0x18] sm:$0xff] }
   0x4   :  { %123 = vmatpush.bf16.msra.mxu0 %v329_v25  ;;  %v339_v46 = vld [vmem:[%s484_s5] ss:$0 sm:$0xff]  ;;  %v340_v51 = vld [vmem:[%s484_s5 + $0x1] ss:$0 sm:$0xff]  ;;  %v335_v58 = vld [vmem:[%s487_s4 + $0x28] sm:$0xff] }
   0x5   :  { %v36_v5 = vsel %vm35_vm0, %v33_v2, 0.0  ;;  %v39_v7 = vsel %vm35_vm0, %v34_v6, 0.0  ;;  %v334_v59 = vld [vmem:[%s487_s4 + $0x20] sm:$0xff]  ;;  %v332_v61 = vld [vmem:[%s487_s4 + $0x10] sm:$0xff]  ;;  %v331_v62 = vld [vmem:[%s487_s4 + $0x8] sm:$0xff] }
   0x6   :  { %37 = vadd.xlane.f32.xlu0 %v36_v5  ;;  %216 = vmatpush.bf16.msra.mxu1 %v336_v57  ;;  %v330_v63 = vld [vmem:[%s487_s4] sm:$0xff] }
   0x7   :  { %v346_v9 = vpop.eup %345  ;;  %v341_v0 = vld [vmem:[%s485_s3] ss:$0 sm:$0xff]  ;;  %v342_v25 = vld [vmem:[%s484_s5 + $0x4] ss:$0 sm:$0xff] }
   0x8   :  { %v43_v10 = vmul.f32 32.0, %v346_v9  ;;  %vm47_vm1 = vweird.f32 %v346_v9  ;;  %124 = vmatpush.bf16.msra.mxu0 %v328_v27 }
   0xa   :  { %v44_v11 = vsub.f32 1.0, %v43_v10  ;;  %217 = vmatpush.bf16.msra.mxu1 %v335_v58  ;;  %v343_v58 = vld [vmem:[%s484_s5 + $0x2] ss:$0 sm:$0xff] }
   0xc   :  { %v45_v12 = vmul.f32 %v346_v9, %v44_v11 }
   0xe   :  { %40 = vadd.xlane.f32.xlu0 %v39_v7  ;;  %v46_v13 = vadd.f32 %v346_v9, %v45_v12  ;;  %218 = vmatpush.bf16.msra.mxu1 %v334_v59 }
  0x10   :  { %v409_v14 = vsel %vm47_vm1, %v346_v9, %v46_v13 }
  0x12   :  { %219 = vmatpush.bf16.msra.mxu1 %v333_v60 }
  0x16   :  { %220 = vmatpush.bf16.msra.mxu1 %v332_v61 }
  0x1a   :  { %221 = vmatpush.bf16.msra.mxu1 %v331_v62 }
  0x1e   :  { %222 = vmatpush.bf16.msra.mxu1 %v330_v63 }
  0x79   :  { %v38_v15 = vpop.xlane.xlu0 %37 }
  0x7a   :  { %v49_v16 = vmul.f32 %v409_v14, %v38_v15 }
  0x7c   :  { %v51_v17 = vsub.f32 %v33_v2, %v49_v16 }
  0x7e   :  { %v53_v18 = vmul.f32 %v51_v17, %v51_v17 }
  0x80   :  { %v55_v19 = vsel %vm35_vm0, %v53_v18, 0.0 }
  0x81   :  { %56 = vadd.xlane.f32.xlu1 %v55_v19  ;;  %v41_v20 = vpop.xlane.xlu0 %40 }
  0x82   :  { %v50_v21 = vmul.f32 %v409_v14, %v41_v20 }
  0x84   :  { %v52_v22 = vsub.f32 %v34_v6, %v50_v21 }
  0x86   :  { %v54_v23 = vmul.f32 %v52_v22, %v52_v22 }
  0x88   :  { %v58_v24 = vsel %vm35_vm0, %v54_v23, 0.0 }
  0x89   :  { %59 = vadd.xlane.f32.xlu1 %v58_v24 }
  0xf4   :  { %v57_v26 = vpop.xlane.xlu1 %56 }
  0xf5   :  { %v61_v28 = vmul.f32 %v57_v26, %v409_v14 }
  0xf7   :  { %v63_v29 = vadd.f32 1e-12, %v61_v28 }
  0xf9   :  { %347 = vrsqrt.f32 %v63_v29  ;;  %vm71_vm3 = vweird.f32 %v63_v29 }
  0xfc   :  { %v60_v30 = vpop.xlane.xlu1 %59 }
  0xfd   :  { %v62_v31 = vmul.f32 %v60_v30, %v409_v14 }
  0xff   :  { %v348_v32 = vpop.eup %347  ;;  %v64_v33 = vadd.f32 1e-12, %v62_v31 }
 0x100   :  { %v66_v34 = vmul.f32 %v348_v32, %v63_v29  ;;  %vm72_vm2 = vweird.f32 %v348_v32 }
 0x101   :  { %349 = vrsqrt.f32 %v64_v33  ;;  %vm73_vm4 = vmor %vm71_vm3, %vm72_vm2  ;;  %vm81_vm6 = vweird.f32 %v64_v33 }
 0x102   :  { %v67_v35 = vmul.f32 %v348_v32, %v66_v34 }
 0x104   :  { %v68_v36 = vmul.f32 0.5, %v67_v35 }
 0x106   :  { %v69_v37 = vsub.f32 1.5, %v68_v36 }
 0x107   :  { %v350_v38 = vpop.eup %349 }
 0x108   :  { %v70_v39 = vmul.f32 %v348_v32, %v69_v37  ;;  %v76_v40 = vmul.f32 %v350_v38, %v64_v33  ;;  %vm82_vm5 = vweird.f32 %v350_v38 }
 0x109   :  { %vm83_vm7 = vmor %vm81_vm6, %vm82_vm5 }
 0x10a   :  { %v77_v41 = vmul.f32 %v350_v38, %v76_v40  ;;  %v74_v42 = vsel %vm73_vm4, %v348_v32, %v70_v39 }
 0x10b   :  { %v85_v45 = vmul.f32 %v74_v42, %v51_v17 }
 0x10c   :  { %v78_v43 = vmul.f32 0.5, %v77_v41 }
 0x10d   :  { %v88_v50 = vmul.f32 %v339_v46, %v85_v45 }
 0x10e   :  { %v79_v44 = vsub.f32 1.5, %v78_v43 }
 0x10f   :  { %v91_v53 = vadd.f32 %v340_v51, %v88_v50 }
 0x110   :  { %v80_v47 = vmul.f32 %v350_v38, %v79_v44 }
 0x112   :  { %v84_v48 = vsel %vm83_vm7, %v350_v38, %v80_v47 }
 0x113   :  { %v86_v49 = vmul.f32 %v84_v48, %v52_v22 }
 0x115   :  { %v89_v52 = vmul.f32 %v339_v46, %v86_v49 }
 0x117   :  { %v92_v54 = vadd.f32 %v340_v51, %v89_v52 }
 0x119   :  { %v93_v55 = vpack.c.bf16 %v92_v54, %v91_v53 }
 0x11b   :  { %295 = vmatmul.msk.bf16.vlgmr.msra.gmra.mxu0 %vm35_vm0, %v93_v55 }
 0x198   :  { %v126_v1 = vpop.f32.mrf.mxu0 }
 0x199   :  { %v127_v2 = vadd.f32 %v341_v0, %v126_v1 }
 0x19b   :  { %v133_v3 = vmul.f32 0.044715, %v127_v2  ;;  %v131_v19 = vmul.f32 0.5, %v127_v2 }
 0x19d   :  { %v135_v4 = vmul.f32 %v133_v3, %v127_v2 }
 0x19f   :  { %v137_v5 = vmul.f32 %v135_v4, %v127_v2 }
 0x1a0   :  { %v128_v6 = vpop.f32.mrf.mxu0 }
 0x1a1   :  { %v129_v7 = vadd.f32 %v341_v0, %v128_v6  ;;  %v139_v8 = vadd.f32 %v137_v5, %v127_v2 }
 0x1a3   :  { %v134_v9 = vmul.f32 0.044715, %v129_v7  ;;  %v141_v11 = vmul.f32 0.7978846, %v139_v8  ;;  %v132_v20 = vmul.f32 0.5, %v129_v7 }
 0x1a5   :  { %v136_v10 = vmul.f32 %v134_v9, %v129_v7  ;;  %351 = vtanh.f32 %v141_v11 }
 0x1a7   :  { %v138_v12 = vmul.f32 %v136_v10, %v129_v7 }
 0x1a9   :  { %v140_v13 = vadd.f32 %v138_v12, %v129_v7 }
 0x1ab   :  { %v142_v15 = vmul.f32 0.7978846, %v140_v13  ;;  %v352_v16 = vpop.eup %351 }
 0x1ac   :  { %v145_v17 = vadd.f32 1.0, %v352_v16 }
 0x1ad   :  { %353 = vtanh.f32 %v142_v15 }
 0x1ae   :  { %v147_v22 = vmul.f32 %v145_v17, %v131_v19 }
 0x1b3   :  { %v354_v18 = vpop.eup %353 }
 0x1b4   :  { %v146_v21 = vadd.f32 1.0, %v354_v18 }
 0x1b6   :  { %v148_v23 = vmul.f32 %v146_v21, %v132_v20 }
 0x1b8   :  { %v149_v24 = vpack.c.bf16 %v148_v23, %v147_v22 }
 0x1ba   :  { %223 = vmatmul.bf16.vlgmr.msra.gmra.mxu1 %v149_v24 }
 0x237   :  { %v224_v26 = vpop.f32.mrf.mxu1 }
 0x238   :  { %v225_v27 = vadd.f32 %v342_v25, %v224_v26 }
 0x23a   :  { %v229_v28 = vadd.f32 %v225_v27, %v91_v53 }
 0x23c   :  { %v231_v29 = vsel %vm35_vm0, %v229_v28, 0.0 }
 0x23d   :  { %232 = vadd.xlane.f32.xlu2 %v231_v29 }
 0x23f   :  { %v226_v30 = vpop.f32.mrf.mxu1 }
 0x240   :  { %v227_v31 = vadd.f32 %v342_v25, %v226_v30 }
 0x242   :  { %v230_v32 = vadd.f32 %v227_v31, %v92_v54 }
 0x244   :  { %v234_v33 = vsel %vm35_vm0, %v230_v32, 0.0 }
 0x245   :  { %235 = vadd.xlane.f32.xlu2 %v234_v33 }
 0x2b0   :  { %v233_v34 = vpop.xlane.xlu2 %232 }
 0x2b1   :  { %v237_v35 = vmul.f32 %v233_v34, %v409_v14 }
 0x2b3   :  { %v239_v36 = vsub.f32 %v229_v28, %v237_v35 }
 0x2b5   :  { %v241_v37 = vmul.f32 %v239_v36, %v239_v36 }
 0x2b7   :  { %v243_v38 = vsel %vm35_vm0, %v241_v37, 0.0 }
 0x2b8   :  { %244 = vadd.xlane.f32.xlu0 %v243_v38  ;;  %v236_v39 = vpop.xlane.xlu2 %235 }
 0x2b9   :  { %v238_v40 = vmul.f32 %v236_v39, %v409_v14 }
 0x2bb   :  { %v240_v41 = vsub.f32 %v230_v32, %v238_v40 }
 0x2bd   :  { %v242_v42 = vmul.f32 %v240_v41, %v240_v41 }
 0x2bf   :  { %v246_v43 = vsel %vm35_vm0, %v242_v42, 0.0 }
 0x2c0   :  { %247 = vadd.xlane.f32.xlu1 %v246_v43 }
 0x32b   :  { %v245_v44 = vpop.xlane.xlu0 %244 }
 0x32c   :  { %v249_v45 = vmul.f32 %v245_v44, %v409_v14 }
 0x32e   :  { %v251_v46 = vadd.f32 1e-12, %v249_v45 }
 0x330   :  { %355 = vrsqrt.f32 %v251_v46  ;;  %vm259_vm9 = vweird.f32 %v251_v46 }
 0x333   :  { %v248_v47 = vpop.xlane.xlu1 %247 }
 0x334   :  { %v250_v48 = vmul.f32 %v248_v47, %v409_v14  ;;  %v344_v14 = vld [vmem:[%s484_s5 + $0x3] ss:$0 sm:$0xff] }
 0x336   :  { %v356_v49 = vpop.eup %355  ;;  %v252_v50 = vadd.f32 1e-12, %v250_v48 }
 0x337   :  { %v254_v51 = vmul.f32 %v356_v49, %v251_v46  ;;  %vm260_vm8 = vweird.f32 %v356_v49 }
 0x338   :  { %357 = vrsqrt.f32 %v252_v50  ;;  %vm261_vm10 = vmor %vm259_vm9, %vm260_vm8  ;;  %vm269_vm12 = vweird.f32 %v252_v50 }
 0x339   :  { %v255_v52 = vmul.f32 %v356_v49, %v254_v51 }
 0x33b   :  { %v256_v53 = vmul.f32 0.5, %v255_v52 }
 0x33d   :  { %v257_v54 = vsub.f32 1.5, %v256_v53 }
 0x33e   :  { %v358_v55 = vpop.eup %357 }
 0x33f   :  { %v258_v56 = vmul.f32 %v356_v49, %v257_v54  ;;  %v264_v57 = vmul.f32 %v358_v55, %v252_v50  ;;  %vm270_vm11 = vweird.f32 %v358_v55 }
 0x340   :  { %vm271_vm13 = vmor %vm269_vm12, %vm270_vm11 }
 0x341   :  { %v262_v59 = vsel %vm261_vm10, %v356_v49, %v258_v56  ;;  %v265_v60 = vmul.f32 %v358_v55, %v264_v57 }
 0x342   :  { %v273_v61 = vmul.f32 %v262_v59, %v239_v36 }
 0x343   :  { %v266_v62 = vmul.f32 0.5, %v265_v60 }
 0x344   :  { %v276_v63 = vmul.f32 %v343_v58, %v273_v61 }
 0x345   :  { %v267_v0 = vsub.f32 1.5, %v266_v62 }
 0x346   :  { %v279_v1 = vadd.f32 %v344_v14, %v276_v63 }
 0x347   :  { %v268_v2 = vmul.f32 %v358_v55, %v267_v0 }
 0x348   :  { %281 = vst.msk [vmem:[%s488_s6] sm:$0xff] %vm35_vm0, %v279_v1 }
 0x349   :  { %v272_v3 = vsel %vm271_vm13, %v358_v55, %v268_v2 }
 0x34a   :  { %v274_v4 = vmul.f32 %v272_v3, %v240_v41 }
 0x34c   :  { %v277_v5 = vmul.f32 %v343_v58, %v274_v4 }
 0x34e   :  { %v280_v6 = vadd.f32 %v344_v14, %v277_v5 }
 0x350   :  { %282 = vst.msk [vmem:[%s488_s6 + $0x8] sm:$0xff] %vm35_vm0, %v280_v6 }

</bundles_post_ra>
